<compile_context>
chip_gen: v5e
topology: v5e:2x2
jax: 0.10.0
libtpu: 0.0.40
codegen_flags: <defaults>
</compile_context>

<pallas_src>
import jax
import jax.numpy as jnp
from jax import lax
from jax.experimental import pallas as pl
from jax.experimental.pallas import tpu as pltpu

_LANES = 128          # lane width of a vreg
_TR_MAX = 4096        # max rows per tile: 4096*128*4B = 2 MiB payload per tile


def _cdiv(a, b):
    return -(-a // b)


def _round_up(n, m):
    return _cdiv(n, m) * m


def fused_affine_kernel(ca_ref, cbe_ref, cbo_ref, cc_ref, x_ref, y_ref):
    # x_ref : VMEM (TR, 128) f32, lanes interleaved [f0, f1, f0, f1, ...]
    # ca/cbe/cbo/cc : VMEM (1, 128) per-lane coefficients (resident across grid)
    # y_ref : VMEM (TR, 128) f32, same interleaved layout
    x = x_ref[...]
    # Lane rotations (XLU). shift = 127 ≡ -1 for a 128-wide lane axis.
    nxt = pltpu.roll(x, shift=_LANES - 1, axis=1)   # lane l <- x[lane l+1]
    prv = pltpu.roll(x, shift=1, axis=1)            # lane l <- x[lane l-1]
    # Even lanes (feature 0):  y0 = x0*W00 + x1*W10 + b0   (x1 comes from `nxt`)
    # Odd  lanes (feature 1):  y1 = x0*W01 + x1*W11 + b1   (x0 comes from `prv`)
    # The zeroed halves of cbe/cbo discard the wrap-around lanes of the rolls.
    y_ref[...] = (x * ca_ref[...]
                  + nxt * cbe_ref[...]
                  + prv * cbo_ref[...]
                  + cc_ref[...])


def _pallas_affine(x, w_eff, b_eff):
    """y = x @ w_eff + b_eff via the lane-interleaved Pallas kernel."""
    B = x.shape[0]
    n = 2 * B                                   # total scalars in x
    r_needed = _cdiv(n, _LANES)                 # rows of 128 interleaved elements

    # Grid sizing: enough steps to keep tiles <= _TR_MAX rows, and >= 2 steps
    # when there is enough work (v7x megacore). Rows are balanced across steps
    # so tail padding stays at a few rows, not a whole tile.
    steps = max(_cdiv(r_needed, _TR_MAX), 2 if r_needed >= 16 else 1)
    tr = _round_up(_cdiv(r_needed, steps), 8)   # sublane multiple
    r_pad = steps * tr

    # Per-lane coefficient rows (computed once in the wrapper, resident in VMEM).
    lane = jnp.arange(_LANES)
    even = (lane % 2) == 0
    ca = jnp.where(even, w_eff[0, 0], w_eff[1, 1]).astype(jnp.float32).reshape(1, _LANES)
    cbe = jnp.where(even, w_eff[1, 0], 0.0).astype(jnp.float32).reshape(1, _LANES)
    cbo = jnp.where(even, 0.0, w_eff[0, 1]).astype(jnp.float32).reshape(1, _LANES)
    cc = jnp.where(even, b_eff[0], b_eff[1]).astype(jnp.float32).reshape(1, _LANES)

    # Free row-major view of (B, 2) -> (r_pad, 128); a pad pass only if needed.
    flat = x.reshape(-1)
    pad = r_pad * _LANES - n
    if pad:
        flat = jnp.pad(flat, (0, pad))
    x2d = flat.reshape(r_pad, _LANES)

    coeff_spec = pl.BlockSpec((1, _LANES), lambda i: (0, 0))
    y2d = pl.pallas_call(
        fused_affine_kernel,
        out_shape=jax.ShapeDtypeStruct((r_pad, _LANES), jnp.float32),
        grid=(steps,),
        in_specs=[coeff_spec, coeff_spec, coeff_spec, coeff_spec,
                  pl.BlockSpec((tr, _LANES), lambda i: (i, 0))],
        out_specs=pl.BlockSpec((tr, _LANES), lambda i: (i, 0)),
        compiler_params=pltpu.CompilerParams(
            dimension_semantics=("parallel",),       # v7x: shard steps over 2 TCs
            vmem_limit_bytes=32 * 1024 * 1024),
    )(ca, cbe, cbo, cc, x2d)

    # Padded tail lanes hold y = bias; slice them off. (Never reduce over the
    # padded rows inside the kernel.)
    return y2d.reshape(-1)[:n].reshape(B, 2)


def mlp_forward(x, w1, b1, w2, b2, *, min_pallas_batch=4096):
    """Forward of Linear(2,64) -> Linear(64,2) -> view(-1, 2)."""
    x = x.astype(jnp.float32)
    B = x.shape[0]

    # Fold the two affine layers into one (valid only because there is no
    # activation between them in the original module).
    w_eff = jnp.dot(w1, w2, precision=lax.Precision.HIGHEST)                 # (2, 2)
    b_eff = (jnp.dot(b1, w2, precision=lax.Precision.HIGHEST) + b2).reshape(-1)  # (2,)

    if B < min_pallas_batch:
        # Tiny batches: kernel launch + lane padding dominates; stay in XLA.
        y = jnp.dot(x, w_eff, precision=lax.Precision.HIGHEST) + b_eff
        return y.reshape(-1, 2)

    return _pallas_affine(x, w_eff, b_eff)


def init_params(key):
    # Mimic torch.nn.Linear default init: U(-1/sqrt(fan_in), 1/sqrt(fan_in)).
    k1, k2, k3, k4 = jax.random.split(key, 4)
    bound1 = 1.0 / jnp.sqrt(2.0)
    bound2 = 1.0 / jnp.sqrt(64.0)
    w1 = jax.random.uniform(k1, (2, 64), jnp.float32, -bound1, bound1)
    b1 = jax.random.uniform(k2, (1, 64), jnp.float32, -bound1, bound1)
    w2 = jax.random.uniform(k3, (64, 2), jnp.float32, -bound2, bound2)
    b2 = jax.random.uniform(k4, (1, 2), jnp.float32, -bound2, bound2)
    return w1, b1, w2, b2


if __name__ == "__main__":
    key = jax.random.PRNGKey(0)
    kx1, kx2, kx3, kp = jax.random.split(key, 4)
    w1, b1, w2, b2 = init_params(kp)

    def reference(x):
        h = jnp.dot(x, w1, precision=lax.Precision.HIGHEST) + b1
        return (jnp.dot(h, w2, precision=lax.Precision.HIGHEST) + b2).reshape(-1, 2)

    # 1) Tiny batch -> auto fallback path (plain XLA affine).
    x_small = jax.random.normal(kx1, (8, 2), jnp.float32)
    out_small = mlp_forward(x_small, w1, b1, w2, b2)
    jax.block_until_ready(out_small)
    assert out_small.shape == (8, 2)
    assert jnp.allclose(out_small, reference(x_small), atol=1e-4, rtol=1e-4)

    # 2) Small, non-tile-aligned batch -> force the Pallas path (exercises padding).
    x_med = jax.random.normal(kx2, (1000, 2), jnp.float32)
    out_med = mlp_forward(x_med, w1, b1, w2, b2, min_pallas_batch=0)
    jax.block_until_ready(out_med)
    assert out_med.shape == (1000, 2)
    assert jnp.allclose(out_med, reference(x_med), atol=1e-4, rtol=1e-4)

    # 3) Larger batch -> Pallas path with a multi-step grid and big tiles.
    x_big = jax.random.normal(kx3, (300_000, 2), jnp.float32)
    out_big = mlp_forward(x_big, w1, b1, w2, b2)
    jax.block_until_ready(out_big)
    assert out_big.shape == (300_000, 2)
    assert jnp.allclose(out_big, reference(x_big), atol=1e-4, rtol=1e-4)

    print("KERNEL_OK")
</pallas_src>

<mosaic_0001>
module attributes {stable_mosaic.version = 11 : i64} {
  func.func @fused_affine_kernel(%arg0: i32, %arg1: memref<1x128xf32, #tpu.memory_space<vmem>>, %arg2: memref<1x128xf32, #tpu.memory_space<vmem>>, %arg3: memref<1x128xf32, #tpu.memory_space<vmem>>, %arg4: memref<1x128xf32, #tpu.memory_space<vmem>>, %arg5: memref<8x128xf32, #tpu.memory_space<vmem>>, %arg6: memref<8x128xf32, #tpu.memory_space<vmem>>) attributes {dimension_semantics = [#tpu.dimension_semantics<parallel>], iteration_bounds = array<i64: 2>, scalar_prefetch = 0 : i64, scratch_operands = 0 : i64, tpu.core_type = #tpu.core_type<tc>, window_params = [{pipeline_mode = #tpu.pipeline_mode<synchronous>, transform_indices = @transform_0, window_bounds = array<i64: 1, 128>}, {pipeline_mode = #tpu.pipeline_mode<synchronous>, transform_indices = @transform_1, window_bounds = array<i64: 1, 128>}, {pipeline_mode = #tpu.pipeline_mode<synchronous>, transform_indices = @transform_2, window_bounds = array<i64: 1, 128>}, {pipeline_mode = #tpu.pipeline_mode<synchronous>, transform_indices = @transform_3, window_bounds = array<i64: 1, 128>}, {transform_indices = @transform_4, window_bounds = array<i64: 8, 128>}, {transform_indices = @transform_5, window_bounds = array<i64: 8, 128>}]} {
    %c0 = arith.constant 0 : index
    %c0_0 = arith.constant 0 : index
    %0 = vector.load %arg5[%c0, %c0_0] : memref<8x128xf32, #tpu.memory_space<vmem>>, vector<8x128xf32>
    %c127_i32 = arith.constant 127 : i32
    %1 = tpu.dynamic_rotate %0 by %c127_i32 dim 1 : vector<8x128xf32>, i32 -> vector<8x128xf32>
    %c1_i32 = arith.constant 1 : i32
    %2 = tpu.dynamic_rotate %0 by %c1_i32 dim 1 : vector<8x128xf32>, i32 -> vector<8x128xf32>
    %c0_1 = arith.constant 0 : index
    %c0_2 = arith.constant 0 : index
    %3 = vector.load %arg1[%c0_1, %c0_2] : memref<1x128xf32, #tpu.memory_space<vmem>>, vector<1x128xf32>
    %4 = vector.broadcast %3 : vector<1x128xf32> to vector<8x128xf32>
    %5 = arith.mulf %0, %4 : vector<8x128xf32>
    %c0_3 = arith.constant 0 : index
    %c0_4 = arith.constant 0 : index
    %6 = vector.load %arg2[%c0_3, %c0_4] : memref<1x128xf32, #tpu.memory_space<vmem>>, vector<1x128xf32>
    %7 = vector.broadcast %6 : vector<1x128xf32> to vector<8x128xf32>
    %8 = arith.mulf %1, %7 : vector<8x128xf32>
    %9 = arith.addf %5, %8 : vector<8x128xf32>
    %c0_5 = arith.constant 0 : index
    %c0_6 = arith.constant 0 : index
    %10 = vector.load %arg3[%c0_5, %c0_6] : memref<1x128xf32, #tpu.memory_space<vmem>>, vector<1x128xf32>
    %11 = vector.broadcast %10 : vector<1x128xf32> to vector<8x128xf32>
    %12 = arith.mulf %2, %11 : vector<8x128xf32>
    %13 = arith.addf %9, %12 : vector<8x128xf32>
    %c0_7 = arith.constant 0 : index
    %c0_8 = arith.constant 0 : index
    %14 = vector.load %arg4[%c0_7, %c0_8] : memref<1x128xf32, #tpu.memory_space<vmem>>, vector<1x128xf32>
    %15 = vector.broadcast %14 : vector<1x128xf32> to vector<8x128xf32>
    %16 = arith.addf %13, %15 : vector<8x128xf32>
    %c0_9 = arith.constant 0 : index
    %c0_10 = arith.constant 0 : index
    %17 = vector.load %arg6[%c0_9, %c0_10] : memref<8x128xf32, #tpu.memory_space<vmem>>, vector<8x128xf32>
    tpu.vector_store %arg6[%c0_9, %c0_10], %16 {strides = array<i32>} : memref<8x128xf32, #tpu.memory_space<vmem>>, vector<8x128xf32>,
    return
  }
  func.func @transform_0(%arg0: i32) -> (i32, i32) {
    %c0_i32 = arith.constant 0 : i32
    %c0_i32_0 = arith.constant 0 : i32
    %c0_i32_1 = arith.constant 0 : i32
    return %c0_i32, %c0_i32_0 : i32, i32
  }
  func.func @transform_1(%arg0: i32) -> (i32, i32) {
    %c0_i32 = arith.constant 0 : i32
    %c0_i32_0 = arith.constant 0 : i32
    %c0_i32_1 = arith.constant 0 : i32
    return %c0_i32, %c0_i32_0 : i32, i32
  }
  func.func @transform_2(%arg0: i32) -> (i32, i32) {
    %c0_i32 = arith.constant 0 : i32
    %c0_i32_0 = arith.constant 0 : i32
    %c0_i32_1 = arith.constant 0 : i32
    return %c0_i32, %c0_i32_0 : i32, i32
  }
  func.func @transform_3(%arg0: i32) -> (i32, i32) {
    %c0_i32 = arith.constant 0 : i32
    %c0_i32_0 = arith.constant 0 : i32
    %c0_i32_1 = arith.constant 0 : i32
    return %c0_i32, %c0_i32_0 : i32, i32
  }
  func.func @transform_4(%arg0: i32) -> (i32, i32) {
    %c0_i32 = arith.constant 0 : i32
    %c0_i32_0 = arith.constant 0 : i32
    return %arg0, %c0_i32 : i32, i32
  }
  func.func @transform_5(%arg0: i32) -> (i32, i32) {
    %c0_i32 = arith.constant 0 : i32
    %c0_i32_0 = arith.constant 0 : i32
    return %arg0, %c0_i32 : i32, i32
  }
}

</mosaic_0001>

<bundles_post_ra>
// kernel: tpu_custom_call.1
= control target key start
LH: loop header
LB: loop body
LE: loop exit
PB: predicated region body
PF: predicated region fallthrough
CT: control target
= control target key end

     0   :  { %10 = vsyncpa [#allocation3], 0  ;;  %s847_s0 = inlined_call_operand.hbm [shape: f32[1,128], index: 0, kind: input, shape index: {}]   ;;  %s848_s1 = inlined_call_operand.hbm [shape: f32[1,128], index: 1, kind: input, shape index: {}]   ;;  %s849_s2 = inlined_call_operand.vmem [shape: f32[1,128], index: 2, kind: input, shape index: {}]   ;;  %s850_s3 = inlined_call_operand.vmem [shape: f32[1,128], index: 3, kind: input, shape index: {}]   ;;  %s851_s4 = inlined_call_operand.hbm [shape: f32[16,128], index: 4, kind: input, shape index: {}]   ;;  %s852_s5 = inlined_call_operand.hbm [shape: f32[16,128], index: 5, kind: output, shape index: {}]  }
   0x1   :  { %11 = vsyncpa [#allocation6], 0 }
   0x2   :  { %12 = vsyncpa [#allocation4], 0 }
   0x3   :  { %14 = vsyncpa [#allocation4 + $0x1], 0  ;;  %s691_s18 = smov 0   ;;  %s693_s19 = smov 0  }
   0x4   :  { %s695_s20 = smov 0   ;;  %s697_s21 = smov 0  }
   0x5 LB: > { %s712_s22 = sadd.s32 4294967295, %s655_s21   ;;  %s402_s23 = sadd.s32 4294967294, %s655_s21   ;;  %s655_s21 = sphi %s697_s21, %s862_s21   ;;  %s651_s20 = sphi %s695_s20, %s861_s20   ;;  %s647_s19 = sphi %s693_s19, %s860_s19   ;;  %s643_s18 = sphi %s691_s18, %s859_s18  }
   0x6   : > { %p124_p0 = scmp.ne.s32.totalorder %s647_s19, %s643_s18  ;;  %p125_p1 = scmp.eq.s32.totalorder %s712_s22, 0 }
   0x7   : > { %p148_p2 = scmp.eq.s32.totalorder %s712_s22, 1  ;;  %p154_p3 = scmp.eq.s32.totalorder %s402_s23, 1 }
   0x8   : > { %p721_p4 = por %p125_p1, %p124_p0  ;;  %p403_p5 = scmp.ge.s32.totalorder %s655_s21, 1 }
   0x9   : > { %p726_p6 = por %p154_p3, %p124_p0  ;;  %p161_p7 = scmp.lt.s32.totalorder %s655_s21, 3 }
   0xa   : > { %s173_s28 = sshll.u32 %s847_s0, 4  ;;  %s657_s30 = smov [#allocation2]   ;;  %s174_s28 = int_to_ptr.hbm [resolvable:$true] %s173_s28 }
   0xb   : > { %p734_p8 = pnand %p403_p5, %p161_p7  ;;  %s175_s6 = sshll.u32 %s657_s30, 4  ;;  %s176_s6 = int_to_ptr.vmem [resolvable:$true] %s175_s6 }
   0xc   : > { %s185_s9 = sshll.u32 %s848_s1, 4  ;;  %s658_s10 = smov [#allocation5]   ;;  %s186_s9 = int_to_ptr.hbm [resolvable:$true] %s185_s9 }
   0xd   : > { %p430_p10 = pneg %p734_p8  ;;  %s187_s11 = sshll.u32 %s658_s10, 4  ;;  %s188_s11 = int_to_ptr.vmem [resolvable:$true] %s187_s11 }
   0xe   : > { %s747_s12 = sadd.s32 1, %s655_s21   ;;  %s111_s13 = sadd.s32 1, %s651_s20 }
   0xf   : > { %p431_p11 = pnand %p430_p10, %p125_p1  ;;  %s108_s14 = ssub.s32 %s655_s21, %s747_s12 }
  0x10   : > { %p118_p12 = scmp.ne.s32.totalorder %s651_s20, %s647_s19  ;;  %p109_p13 = scmp.eq.s32.totalorder %s108_s14, 0 }
  0x11   : > { %433 = dma.hbm_to_vmem [thread:$0]  (!%p431_p11), %s174_s28, 16, %s176_s6, [#allocation3]  }
  0x12   : > { %436 = dma.hbm_to_vmem [thread:$0]  (!%p431_p11), %s186_s9, 16, %s188_s11, [#allocation6]  }
  0x13   : > { %p119_p0 = scmp.eq.s32.totalorder %s655_s21, 0  ;;  %p757_p3 = por %p148_p2, %p118_p12 }
  0x14   : > { %s762_s16 = scalar_select %p109_p13, %s651_s20, %s111_s13  }
  0x15   : > { %p120_p5 = por %p119_p0, %p118_p12  ;;  %p447_p7 = scmp.lt.s32.totalorder %s655_s21, 2 }
  0x16   : > { %s204_s17 = sand.u32 1, %s655_s21   ;;  %s206_s23 = sand.u32 1, %s651_s20  }
  0x17   : > { %s407_s26 = sshll.u32 %s206_s23, 3  ;;  %s408_s27 = sshll.u32 %s655_s21, 3 }
  0x18   : > { %s212_s6 = scalar_lea.hbm %s851_s4, %s408_s27  ;;  %s208_s8 = scalar_lea.vmem [#allocation7], %s407_s26 }
  0x19   : > { %s214_s7 = sshll.u32 %s212_s6, 4  ;;  %s216_s9 = sshll.u32 %s208_s8, 4  ;;  %s215_s7 = int_to_ptr.hbm [resolvable:$true] %s214_s7  ;;  %s217_s9 = int_to_ptr.vmem [resolvable:$true] %s216_s9 }
  0x1a   : > { %p771_p2 = pnand %p447_p7, %p120_p5  ;;  %s205_s11 = scalar_lea.sflag [#allocation3], %s204_s17 }
  0x1b   : > { %s551_s13 = sshra.s32 %s215_s7, 4  ;;  %s558_s26 = scalar_lea.hbm %s851_s4, 16  ;;  %s552_s13 = int_to_ptr.hbm [resolvable:$true] %s551_s13 }
  0x1c   : > { %s553_s14 = scalar_lea.hbm %s552_s13, 8  ;;  %p555_p11 = pneg %p771_p2 }
  0x1d   : > { %p554_p10 = scmp.ne.s32.totalorder %s552_s13, %s553_s14  ;;  %p559_p0 = scmp.lt.s32.totalorder %s552_s13, %s851_s4 }
  0x1e   : > { %p560_p5 = scmp.lt.s32.totalorder %s558_s26, %s553_s14 }
  0x1f   : > { %p556_p12 = pnand %p555_p11, %p554_p10 }
  0x20   : > { %p561_p7 = por %p560_p5, %p559_p0 }
  0x21   : > { %p557_p13 = pneg %p556_p12 }
  0x23   : > { %p562_p9 = pnand %p561_p7, %p557_p13 }
  0x25   : > { %565 = shalt.err (!%p562_p9)
}
  0x26   : > { %440 = dma.hbm_to_vmem [thread:$0]  (!%p771_p2), %s215_s7, 128, %s217_s9, %s205_s11  }
  0x27   : > { %225 = sbr.rel (%p734_p8) target bundleno = 184 (0xb8), region = 40 }
  0x2c   : > { %626 = dma.done.wait (%p125_p1), [#allocation3], 16  }
  0x2d   : > { %628 = vsyncadd (%p125_p1), [#allocation3], 4294967280 }
  0x2e   : > { %630 = dma.done.wait (%p125_p1), [#allocation6], 16  }
  0x2f   : > { %632 = vsyncadd (%p125_p1), [#allocation6], 4294967280  ;;  %s237_s17 = sand.u32 1, %s712_s22   ;;  %s239_s6 = sand.u32 1, %s647_s19  }
  0x30   : > { %s799_s29 = sshll.u32 %s239_s6, 3  ;;  %s238_s7 = scalar_lea.sflag [#allocation3], %s237_s17 }
  0x31   : > { %s241_s8 = scalar_lea.vmem [#allocation7], %s799_s29 }
  0x32   : > { %634 = dma.done.wait (%p721_p4), %s238_s7, 128  }
  0x33   : > { %636 = vsyncadd (%p721_p4), %s238_s7, 4294967168  ;;  %v269_v0 = vld [vmem:[%s241_s8] sm:$0xff]  ;;  %s659_s9 = smov 127   ;;  %s660_s10 = smov 1   ;;  %v487_v2 = vld [vmem:[#allocation2] ss:$0 sm:$0xff] }
  0x34   : > { %270 = vrot.lane.b32.xlu0 %v269_v0, %s659_s9  ;;  %v488_v3 = vld [vmem:[#allocation5] ss:$0 sm:$0xff]  ;;  %s415_s11 = sshll.u32 %s712_s22, 3  ;;  %v278_v4 = vmul.f32 %v487_v2, %v269_v0  ;;  %v489_v6 = vld [vmem:[%s849_s2] ss:$0 sm:$0xff]  ;;  %s268_s22 = scalar_lea.vmem [#allocation8], %s799_s29 }
  0x35   : > { %s308_s27 = scalar_lea.hbm %s852_s5, %s415_s11  ;;  %v490_v9 = vld [vmem:[%s850_s3] ss:$0 sm:$0xff]  ;;  %s310_s30 = sshll.u32 %s268_s22, 4  ;;  %s311_s30 = int_to_ptr.vmem [resolvable:$true] %s310_s30 }
  0x36   : > { %s312_s17 = sshll.u32 %s308_s27, 4  ;;  %s298_s7 = scalar_lea.sflag [#allocation4], %s239_s6  ;;  %s313_s17 = int_to_ptr.hbm [resolvable:$true] %s312_s17 }
  0x37   : > { %s595_s8 = sshra.s32 %s313_s17, 4  ;;  %s601_s29 = scalar_lea.hbm %s852_s5, 16  ;;  %s596_s8 = int_to_ptr.hbm [resolvable:$true] %s595_s8 }
  0x38   : > { %s597_s9 = scalar_lea.hbm %s596_s8, 8  ;;  %p602_p9 = scmp.lt.s32.totalorder %s596_s8, %s852_s5 }
  0x39   : > { %p598_p1 = scmp.ne.s32.totalorder %s596_s8, %s597_s9  ;;  %p603_p2 = scmp.lt.s32.totalorder %s601_s29, %s597_s9 }
  0x3b   : > { %p599_p4 = pnand %p598_p1, %p757_p3  ;;  %p604_p10 = por %p603_p2, %p602_p9 }
  0x3c   : > { %272 = vrot.lane.b32.xlu0 %v269_v0, %s660_s10 }
  0x3d   : > { %p600_p8 = pneg %p599_p4 }
  0x3f   : > { %p605_p11 = pnand %p604_p10, %p600_p8 }
  0xa6   : > { %v271_v1 = vpop.permute.xlu0 %270 }
  0xa7   : > { %v283_v5 = vmul.f32 %v488_v3, %v271_v1 }
  0xa9   : > { %v284_v8 = vadd.f32 %v283_v5, %v278_v4 }
  0xae   : > { %v273_v7 = vpop.permute.xlu0 %272 }
  0xaf   : > { %v289_v10 = vmul.f32 %v489_v6, %v273_v7 }
  0xb1   : > { %v290_v11 = vadd.f32 %v289_v10, %v284_v8 }
  0xb3   : > { %v295_v12 = vadd.f32 %v490_v9, %v290_v11 }
  0xb5   : > { %296 = vst [vmem:[%s268_s22] sm:$0xff] %v295_v12 }
  0xb6   : > { %608 = shalt.err (!%p605_p11)
}
  0xb7   : > { %428 = dma.vmem_to_hbm [thread:$0]  (%p757_p3), %s311_s30, 128, %s313_s17, %s298_s7  }
  0xb8 PF: > { %s324_s6 = sand.u32 1, %s643_s18   ;;  %p858_p12 = scmp.ge.s32.totalorder %s655_s21, 2 }
  0xb9   : > { %s325_s24 = scalar_lea.sflag [#allocation4], %s324_s6 }
  0xba   : > { %p442_p13 = pnand %p858_p12, %p726_p6 }
  0xbc   : > { %p443_p0 = pneg %p442_p13 }
  0xbe   : > { %638 = dma.done.wait (%p443_p0), %s325_s24, 128  }
  0xbf   : > { %640 = vsyncadd (%p443_p0), %s325_s24, 4294967168  ;;  %p17_p5 = scmp.ge.s32.totalorder %s747_s12, 4   ;;  %s859_s18 = smov %s647_s19 }
  0xc0   : > { %s860_s19 = smov %s651_s20  ;;  %s861_s20 = smov %s762_s16 }
  0xc1   : > { %s862_s21 = smov %s747_s12  ;;  %19 = sbr.rel (!%p17_p5) target bundleno = 5 (0x5), region = 92 }
  0xc6   :  { %331 = vsyncpa [#allocation3], 1 }
  0xc7   :  { %333 = vsyncpa [#allocation3 + $0x1], 1 }
  0xc8   :  { %334 = vsyncpa [#allocation6], 1 }
  0xc9   :  { %335 = vsyncpa [#allocation4], 1 }
  0xca   :  { %337 = vsyncpa [#allocation4 + $0x1], 1 }

</bundles_post_ra>
